<compile_context>
chip_gen: v6e
topology: v6e:2x2x1
jax: 0.10.0
libtpu: 0.0.40
codegen_flags: <defaults>
</compile_context>

<pallas_src>
import jax
import jax.numpy as jnp
from jax import lax
from jax.experimental import pallas as pl
from jax.experimental.pallas import tpu as pltpu


# ------------------------------ fused kernel ---------------------------------

def _make_kernel(T, Ha, Hb, n_fused, n_ex_a, n_ex_b):
    Hc = Ha + Hb

    def run_layer(xp, whh, H):
        """LSTM recurrence over T steps.  xp: (T,4H) value (x @ W_ih + b),
        whh: (H,4H) value (resident in vregs), gate layout [i | f | o | g]."""
        h = jnp.zeros((1, H), jnp.float32)
        c = jnp.zeros((1, H), jnp.float32)
        hs = []
        # Static unroll: h_t collected as values, single dense materialization.
        for t in range(T):
            gates = xp[t:t + 1, :] + jnp.dot(
                h, whh, preferred_element_type=jnp.float32)      # (1, 4H)
            sig = jax.nn.sigmoid(gates[:, :3 * H])               # i, f, o
            g = jnp.tanh(gates[:, 3 * H:])                       # g
            i = sig[:, :H]
            f = sig[:, H:2 * H]
            o = sig[:, 2 * H:]
            c = f * c + i * g
            h = o * jnp.tanh(c)
            hs.append(h)
        return jnp.concatenate(hs, axis=0)                       # (T, H)

    def kernel(*refs):
        it = iter(refs)
        x1_ref = next(it)
        x2_ref = next(it)
        fused = [(next(it), next(it), next(it)) for _ in range(n_fused)]
        ex_a = [(next(it), next(it), next(it)) for _ in range(n_ex_a)]
        ex_b = [(next(it), next(it), next(it)) for _ in range(n_ex_b)]
        bn_ref = next(it)          # (2, Hc): row 0 = gamma, row 1 = beta
        wm_ref = next(it)          # (Hc, hidden)
        bm_ref = next(it)          # (1, hidden)
        wf_ref = next(it)          # (hidden, out_pad) — lane-dense (zero-padded)
        bf_ref = next(it)          # (1, out_pad)
        out_ref = next(it)         # (T, out_pad)

        # ----- fused (block-diagonal) LSTM stack: both branches at once ------
        seq = jnp.concatenate([x1_ref[...], x2_ref[...]], axis=1)   # (T, Da+Db)
        for (wih_ref, whh_ref, b_ref) in fused:
            # One MXU matmul for all timesteps; biases pre-summed at prep time.
            xp = jnp.dot(seq, wih_ref[...],
                         preferred_element_type=jnp.float32) + b_ref[...]
            seq = run_layer(xp, whh_ref[...], Hc)                   # (T, Hc)
            # TODO(synk): inter-layer dropout(p=0.5) omitted (eval-mode identity)

        # ----- leftover layers if num_layers_a != num_layers_b ---------------
        if n_ex_a or n_ex_b:
            seq_a = seq[:, :Ha]
            seq_b = seq[:, Ha:]
            for (wih_ref, whh_ref, b_ref) in ex_a:
                xp = jnp.dot(seq_a, wih_ref[...],
                             preferred_element_type=jnp.float32) + b_ref[...]
                seq_a = run_layer(xp, whh_ref[...], Ha)
            for (wih_ref, whh_ref, b_ref) in ex_b:
                xp = jnp.dot(seq_b, wih_ref[...],
                             preferred_element_type=jnp.float32) + b_ref[...]
                seq_b = run_layer(xp, whh_ref[...], Hb)
            seq = jnp.concatenate([seq_a, seq_b], axis=1)           # (T, Hc)

        # ----- cat -> BatchNorm1d (training stats) -> merge + ReLU -> fc3 ----
        bn = bn_ref[...]
        mean = jnp.mean(seq, axis=0, keepdims=True)
        var = jnp.mean((seq - mean) ** 2, axis=0, keepdims=True)    # biased var
        xn = (seq - mean) * lax.rsqrt(var + 1e-5)
        xn = xn * bn[0:1, :] + bn[1:2, :]
        hm = jnp.dot(xn, wm_ref[...],
                     preferred_element_type=jnp.float32) + bm_ref[...]
        hm = jnp.maximum(hm, 0.0)
        # Lane-dense output store (out_pad = multiple of 128, zero-padded cols).
        out_ref[...] = jnp.dot(
            hm, wf_ref[...], preferred_element_type=jnp.float32) + bf_ref[...]

    return kernel


# --------------------------------- forward -----------------------------------

def forward(packed, x1, x2):
    T = x1.shape[0]
    Ha, Hb = packed["Ha"], packed["Hb"]
    fused, ex_a, ex_b = packed["fused"], packed["ex_a"], packed["ex_b"]

    args = [x1, x2]
    for layer in fused + ex_a + ex_b:
        args.extend(layer)
    args.extend([packed["bn"], packed["merge_w"], packed["merge_b"],
                 packed["fc3_w"], packed["fc3_b"]])

    out_pad = packed["fc3_w"].shape[1]
    vmem = pl.BlockSpec(memory_space=pltpu.MemorySpace.VMEM)
    out = pl.pallas_call(
        _make_kernel(T, Ha, Hb, len(fused), len(ex_a), len(ex_b)),
        out_shape=jax.ShapeDtypeStruct((T, out_pad), jnp.float32),
        in_specs=[vmem] * len(args),
        out_specs=vmem,
    )(*args)
    return out[:, :packed["out_dim"]]


# --------------------------- parameter prep / packing -------------------------

def _uniform(key, shape, scale):
    return jax.random.uniform(key, shape, jnp.float32, -scale, scale)


def init_params(key, input_dim_a, input_dim_b, hidden_dim_a, hidden_dim_b,
                hidden_dim, output_dim, num_layers_a, num_layers_b):
    """Raw (torch-layout) parameters: W^T with gate columns in torch order
    [i, f, g, o].  These feed both the reference and the kernel packer."""
    keys = iter(jax.random.split(key, 64))
    params = {}

    def make_lstm(num_layers, input_dim, H):
        layers = []
        s = 1.0 / jnp.sqrt(H)
        for l in range(num_layers):
            d_in = input_dim if l == 0 else H
            layers.append((
                _uniform(next(keys), (d_in, 4 * H), s),   # W_ih^T  [i f g o]
                _uniform(next(keys), (H, 4 * H), s),      # W_hh^T  [i f g o]
                _uniform(next(keys), (1, 4 * H), s),      # b_ih
                _uniform(next(keys), (1, 4 * H), s),      # b_hh
            ))
        return layers

    params["lstm_a"] = make_lstm(num_layers_a, input_dim_a, hidden_dim_a)
    params["lstm_b"] = make_lstm(num_layers_b, input_dim_b, hidden_dim_b)

    cat_dim = hidden_dim_a + hidden_dim_b
    params["bn_gamma"] = jnp.ones((1, cat_dim), jnp.float32)
    params["bn_beta"] = jnp.zeros((1, cat_dim), jnp.float32)

    sm = 1.0 / jnp.sqrt(cat_dim)
    params["merge_w"] = _uniform(next(keys), (cat_dim, hidden_dim), sm)   # W^T
    params["merge_b"] = _uniform(next(keys), (1, hidden_dim), sm)
    sf = 1.0 / jnp.sqrt(hidden_dim)
    params["fc3_w"] = _uniform(next(keys), (hidden_dim, output_dim), sf)  # W^T
    params["fc3_b"] = _uniform(next(keys), (1, output_dim), sf)
    return params


def _perm_gates(w, H):
    """Reorder gate column blocks from torch [i, f, g, o] to kernel [i, f, o, g]."""
    return jnp.concatenate(
        [w[..., 0:H], w[..., H:2 * H], w[..., 3 * H:4 * H], w[..., 2 * H:3 * H]],
        axis=-1)


def _pack_single_layer(layer, H):
    wih, whh, bih, bhh = layer
    return (_perm_gates(wih, H), _perm_gates(whh, H), _perm_gates(bih + bhh, H))


def _pack_fused_layer(layer_a, layer_b, Ha, Hb):
    """Pack one LSTM layer of each branch into a block-structured fused layer.

    Fused gate column layout: [i_a i_b | f_a f_b | o_a o_b | g_a g_b]
    (gate-major, branch-minor).  W_hh is block-diagonal per branch; W_ih maps
    the concatenated input [in_a | in_b] to the corresponding branch columns."""
    wih_a, whh_a, bih_a, bhh_a = layer_a
    wih_b, whh_b, bih_b, bhh_b = layer_b
    Hc = Ha + Hb
    da, db = wih_a.shape[0], wih_b.shape[0]

    pa = _perm_gates(wih_a, Ha)                  # (da, 4Ha) in [i f o g]
    pb = _perm_gates(wih_b, Hb)
    qa = _perm_gates(whh_a, Ha)                  # (Ha, 4Ha)
    qb = _perm_gates(whh_b, Hb)
    ba = _perm_gates(bih_a + bhh_a, Ha)          # (1, 4Ha), biases pre-summed
    bb = _perm_gates(bih_b + bhh_b, Hb)

    wih_f = jnp.zeros((da + db, 4 * Hc), jnp.float32)
    whh_f = jnp.zeros((Hc, 4 * Hc), jnp.float32)
    b_f = jnp.zeros((1, 4 * Hc), jnp.float32)
    for gi in range(4):
        ca = slice(gi * Hc, gi * Hc + Ha)        # branch A cols of gate gi
        cb = slice(gi * Hc + Ha, (gi + 1) * Hc)  # branch B cols of gate gi
        wih_f = wih_f.at[0:da, ca].set(pa[:, gi * Ha:(gi + 1) * Ha])
        wih_f = wih_f.at[da:da + db, cb].set(pb[:, gi * Hb:(gi + 1) * Hb])
        whh_f = whh_f.at[0:Ha, ca].set(qa[:, gi * Ha:(gi + 1) * Ha])
        whh_f = whh_f.at[Ha:Hc, cb].set(qb[:, gi * Hb:(gi + 1) * Hb])
        b_f = b_f.at[:, ca].set(ba[:, gi * Ha:(gi + 1) * Ha])
        b_f = b_f.at[:, cb].set(bb[:, gi * Hb:(gi + 1) * Hb])
    return wih_f, whh_f, b_f


def pack_params(params):
    """Convert raw params into the fused / permuted kernel operand set."""
    lstm_a, lstm_b = params["lstm_a"], params["lstm_b"]
    nla, nlb = len(lstm_a), len(lstm_b)
    Ha = lstm_a[0][1].shape[0]
    Hb = lstm_b[0][1].shape[0]
    n_fused = min(nla, nlb)

    fused = [_pack_fused_layer(lstm_a[l], lstm_b[l], Ha, Hb)
             for l in range(n_fused)]
    ex_a = [_pack_single_layer(lstm_a[l], Ha) for l in range(n_fused, nla)]
    ex_b = [_pack_single_layer(lstm_b[l], Hb) for l in range(n_fused, nlb)]

    bn = jnp.concatenate([params["bn_gamma"], params["bn_beta"]], axis=0)

    hidden = params["merge_w"].shape[1]
    out_dim = params["fc3_w"].shape[1]
    out_pad = ((out_dim + 127) // 128) * 128     # lane-dense head
    fc3_w = jnp.zeros((hidden, out_pad), jnp.float32).at[:, :out_dim].set(
        params["fc3_w"])
    fc3_b = jnp.zeros((1, out_pad), jnp.float32).at[:, :out_dim].set(
        params["fc3_b"])

    return dict(fused=fused, ex_a=ex_a, ex_b=ex_b, bn=bn,
                merge_w=params["merge_w"], merge_b=params["merge_b"],
                fc3_w=fc3_w, fc3_b=fc3_b,
                Ha=Ha, Hb=Hb, out_dim=out_dim)


# --------------------------- pure-JAX reference -------------------------------

def reference_forward(params, x1, x2):
    """Same math with torch gate order, no Pallas — validates the fused kernel
    AND the block-diagonal / gate-permutation packing."""
    HI = lax.Precision.HIGHEST

    def run_lstm(layers, x):
        out = x
        for (wih, whh, bih, bhh) in layers:
            H = whh.shape[0]
            xp = jnp.dot(out, wih, precision=HI) + bih + bhh   # (T, 4H)

            def step(carry, xp_t):
                h, c = carry
                gates = xp_t + jnp.dot(h, whh, precision=HI)
                i = jax.nn.sigmoid(gates[0:H])
                f = jax.nn.sigmoid(gates[H:2 * H])
                g = jnp.tanh(gates[2 * H:3 * H])
                o = jax.nn.sigmoid(gates[3 * H:4 * H])
                c = f * c + i * g
                h = o * jnp.tanh(c)
                return (h, c), h

            (_, _), hs = lax.scan(step, (jnp.zeros(H), jnp.zeros(H)), xp)
            out = hs
        return out

    a = run_lstm(params["lstm_a"], x1)
    b = run_lstm(params["lstm_b"], x2)
    x = jnp.concatenate([a, b], axis=1)
    mean = jnp.mean(x, axis=0, keepdims=True)
    var = jnp.mean((x - mean) ** 2, axis=0, keepdims=True)
    xn = (x - mean) / jnp.sqrt(var + 1e-5) * params["bn_gamma"] + params["bn_beta"]
    h = jnp.maximum(jnp.dot(xn, params["merge_w"], precision=HI)
                    + params["merge_b"], 0.0)
    return jnp.dot(h, params["fc3_w"], precision=HI) + params["fc3_b"]


# ----------------------------------- demo -------------------------------------

if __name__ == "__main__":
    # Small shapes consistent with the module's 2-D (unbatched, batch_first) use.
    T = 8
    input_dim_a, input_dim_b = 12, 10
    hidden_dim_a, hidden_dim_b = 32, 32
    hidden_dim, output_dim = 32, 4
    num_layers_a, num_layers_b = 1, 1

    key = jax.random.PRNGKey(0)
    kp, k1, k2 = jax.random.split(key, 3)
    params = init_params(kp, input_dim_a, input_dim_b, hidden_dim_a,
                         hidden_dim_b, hidden_dim, output_dim,
                         num_layers_a, num_layers_b)
    x1 = jax.random.normal(k1, (T, input_dim_a), jnp.float32)
    x2 = jax.random.normal(k2, (T, input_dim_b), jnp.float32)

    packed = pack_params(params)
    out = jax.block_until_ready(forward(packed, x1, x2))
    ref = jax.block_until_ready(reference_forward(params, x1, x2))

    assert out.shape == (T, output_dim), out.shape
    assert jnp.all(jnp.isfinite(out))
    err = float(jnp.max(jnp.abs(out - ref)))
    assert err < 1e-3, f"max abs err vs reference: {err}"
    print("KERNEL_OK")
</pallas_src>

<mosaic_0001>
module attributes {stable_mosaic.version = 11 : i64} {
  func.func @kernel(%arg0: memref<8x12xf32, #tpu.memory_space<vmem>>, %arg1: memref<8x10xf32, #tpu.memory_space<vmem>>, %arg2: memref<22x256xf32, #tpu.memory_space<vmem>>, %arg3: memref<64x256xf32, #tpu.memory_space<vmem>>, %arg4: memref<1x256xf32, #tpu.memory_space<vmem>>, %arg5: memref<2x64xf32, #tpu.memory_space<vmem>>, %arg6: memref<64x32xf32, #tpu.memory_space<vmem>>, %arg7: memref<1x32xf32, #tpu.memory_space<vmem>>, %arg8: memref<32x128xf32, #tpu.memory_space<vmem>>, %arg9: memref<1x128xf32, #tpu.memory_space<vmem>>, %arg10: memref<8x128xf32, #tpu.memory_space<vmem>>) attributes {dimension_semantics = [], scalar_prefetch = 0 : i64, scratch_operands = 0 : i64, tpu.core_type = #tpu.core_type<tc>} {
    %c0 = arith.constant 0 : index
    %c0_0 = arith.constant 0 : index
    %0 = vector.load %arg0[%c0, %c0_0] : memref<8x12xf32, #tpu.memory_space<vmem>>, vector<8x12xf32>
    %c0_1 = arith.constant 0 : index
    %c0_2 = arith.constant 0 : index
    %1 = vector.load %arg1[%c0_1, %c0_2] : memref<8x10xf32, #tpu.memory_space<vmem>>, vector<8x10xf32>
    %2 = tpu.concatenate %0, %1 in 1 : vector<8x12xf32>, vector<8x10xf32> -> vector<8x22xf32>
    %c0_3 = arith.constant 0 : index
    %c0_4 = arith.constant 0 : index
    %3 = vector.load %arg2[%c0_3, %c0_4] : memref<22x256xf32, #tpu.memory_space<vmem>>, vector<22x256xf32>
    %cst = arith.constant dense<0.000000e+00> : vector<8x256xf32>
    %4 = tpu.matmul %2, %3, %cst {dimension_numbers = #tpu.dot_dimension_numbers<[1], [0], [0], [1], [0, 0, 1, 1], [], []>} : vector<8x22xf32>, vector<22x256xf32>, vector<8x256xf32> -> vector<8x256xf32>
    %c0_5 = arith.constant 0 : index
    %c0_6 = arith.constant 0 : index
    %5 = vector.load %arg4[%c0_5, %c0_6] : memref<1x256xf32, #tpu.memory_space<vmem>>, vector<1x256xf32>
    %6 = vector.broadcast %5 : vector<1x256xf32> to vector<8x256xf32>
    %7 = arith.addf %4, %6 : vector<8x256xf32>
    %c0_7 = arith.constant 0 : index
    %c0_8 = arith.constant 0 : index
    %8 = vector.load %arg3[%c0_7, %c0_8] : memref<64x256xf32, #tpu.memory_space<vmem>>, vector<64x256xf32>
    %cst_9 = arith.constant 0.000000e+00 : f32
    %9 = vector.broadcast %cst_9 : f32 to vector<1x64xf32>
    %cst_10 = arith.constant 0.000000e+00 : f32
    %10 = vector.broadcast %cst_10 : f32 to vector<1x64xf32>
    %11 = vector.extract_strided_slice %7 {offsets = [0, 0], sizes = [1, 256], strides = [1, 1]} : vector<8x256xf32> to vector<1x256xf32>
    %cst_11 = arith.constant dense<0.000000e+00> : vector<1x256xf32>
    %12 = tpu.matmul %9, %8, %cst_11 {dimension_numbers = #tpu.dot_dimension_numbers<[1], [0], [0], [1], [0, 0, 1, 1], [], []>} : vector<1x64xf32>, vector<64x256xf32>, vector<1x256xf32> -> vector<1x256xf32>
    %13 = arith.addf %11, %12 : vector<1x256xf32>
    %14 = vector.extract_strided_slice %13 {offsets = [0, 0], sizes = [1, 192], strides = [1, 1]} : vector<1x256xf32> to vector<1x192xf32>
    %15 = arith.negf %14 : vector<1x192xf32>
    %16 = math.exp %15 : vector<1x192xf32>
    %cst_12 = arith.constant 1.000000e+00 : f32
    %17 = vector.broadcast %cst_12 : f32 to vector<1x192xf32>
    %18 = arith.addf %17, %16 : vector<1x192xf32>
    %19 = arith.divf %17, %18 : vector<1x192xf32>
    %20 = vector.extract_strided_slice %13 {offsets = [0, 192], sizes = [1, 64], strides = [1, 1]} : vector<1x256xf32> to vector<1x64xf32>
    %21 = math.tanh %20 : vector<1x64xf32>
    %22 = vector.extract_strided_slice %19 {offsets = [0, 0], sizes = [1, 64], strides = [1, 1]} : vector<1x192xf32> to vector<1x64xf32>
    %23 = vector.extract_strided_slice %19 {offsets = [0, 64], sizes = [1, 64], strides = [1, 1]} : vector<1x192xf32> to vector<1x64xf32>
    %24 = vector.extract_strided_slice %19 {offsets = [0, 128], sizes = [1, 64], strides = [1, 1]} : vector<1x192xf32> to vector<1x64xf32>
    %25 = arith.mulf %23, %10 : vector<1x64xf32>
    %26 = arith.mulf %22, %21 : vector<1x64xf32>
    %27 = arith.addf %25, %26 : vector<1x64xf32>
    %28 = math.tanh %27 : vector<1x64xf32>
    %29 = arith.mulf %24, %28 : vector<1x64xf32>
    %30 = vector.extract_strided_slice %7 {offsets = [1, 0], sizes = [1, 256], strides = [1, 1]} : vector<8x256xf32> to vector<1x256xf32>
    %cst_13 = arith.constant dense<0.000000e+00> : vector<1x256xf32>
    %31 = tpu.matmul %29, %8, %cst_13 {dimension_numbers = #tpu.dot_dimension_numbers<[1], [0], [0], [1], [0, 0, 1, 1], [], []>} : vector<1x64xf32>, vector<64x256xf32>, vector<1x256xf32> -> vector<1x256xf32>
    %32 = arith.addf %30, %31 : vector<1x256xf32>
    %33 = vector.extract_strided_slice %32 {offsets = [0, 0], sizes = [1, 192], strides = [1, 1]} : vector<1x256xf32> to vector<1x192xf32>
    %34 = arith.negf %33 : vector<1x192xf32>
    %35 = math.exp %34 : vector<1x192xf32>
    %cst_14 = arith.constant 1.000000e+00 : f32
    %36 = vector.broadcast %cst_14 : f32 to vector<1x192xf32>
    %37 = arith.addf %36, %35 : vector<1x192xf32>
    %38 = arith.divf %36, %37 : vector<1x192xf32>
    %39 = vector.extract_strided_slice %32 {offsets = [0, 192], sizes = [1, 64], strides = [1, 1]} : vector<1x256xf32> to vector<1x64xf32>
    %40 = math.tanh %39 : vector<1x64xf32>
    %41 = vector.extract_strided_slice %38 {offsets = [0, 0], sizes = [1, 64], strides = [1, 1]} : vector<1x192xf32> to vector<1x64xf32>
    %42 = vector.extract_strided_slice %38 {offsets = [0, 64], sizes = [1, 64], strides = [1, 1]} : vector<1x192xf32> to vector<1x64xf32>
    %43 = vector.extract_strided_slice %38 {offsets = [0, 128], sizes = [1, 64], strides = [1, 1]} : vector<1x192xf32> to vector<1x64xf32>
    %44 = arith.mulf %42, %27 : vector<1x64xf32>
    %45 = arith.mulf %41, %40 : vector<1x64xf32>
    %46 = arith.addf %44, %45 : vector<1x64xf32>
    %47 = math.tanh %46 : vector<1x64xf32>
    %48 = arith.mulf %43, %47 : vector<1x64xf32>
    %49 = vector.extract_strided_slice %7 {offsets = [2, 0], sizes = [1, 256], strides = [1, 1]} : vector<8x256xf32> to vector<1x256xf32>
    %cst_15 = arith.constant dense<0.000000e+00> : vector<1x256xf32>
    %50 = tpu.matmul %48, %8, %cst_15 {dimension_numbers = #tpu.dot_dimension_numbers<[1], [0], [0], [1], [0, 0, 1, 1], [], []>} : vector<1x64xf32>, vector<64x256xf32>, vector<1x256xf32> -> vector<1x256xf32>
    %51 = arith.addf %49, %50 : vector<1x256xf32>
    %52 = vector.extract_strided_slice %51 {offsets = [0, 0], sizes = [1, 192], strides = [1, 1]} : vector<1x256xf32> to vector<1x192xf32>
    %53 = arith.negf %52 : vector<1x192xf32>
    %54 = math.exp %53 : vector<1x192xf32>
    %cst_16 = arith.constant 1.000000e+00 : f32
    %55 = vector.broadcast %cst_16 : f32 to vector<1x192xf32>
    %56 = arith.addf %55, %54 : vector<1x192xf32>
    %57 = arith.divf %55, %56 : vector<1x192xf32>
    %58 = vector.extract_strided_slice %51 {offsets = [0, 192], sizes = [1, 64], strides = [1, 1]} : vector<1x256xf32> to vector<1x64xf32>
    %59 = math.tanh %58 : vector<1x64xf32>
    %60 = vector.extract_strided_slice %57 {offsets = [0, 0], sizes = [1, 64], strides = [1, 1]} : vector<1x192xf32> to vector<1x64xf32>
    %61 = vector.extract_strided_slice %57 {offsets = [0, 64], sizes = [1, 64], strides = [1, 1]} : vector<1x192xf32> to vector<1x64xf32>
    %62 = vector.extract_strided_slice %57 {offsets = [0, 128], sizes = [1, 64], strides = [1, 1]} : vector<1x192xf32> to vector<1x64xf32>
    %63 = arith.mulf %61, %46 : vector<1x64xf32>
    %64 = arith.mulf %60, %59 : vector<1x64xf32>
    %65 = arith.addf %63, %64 : vector<1x64xf32>
    %66 = math.tanh %65 : vector<1x64xf32>
    %67 = arith.mulf %62, %66 : vector<1x64xf32>
    %68 = vector.extract_strided_slice %7 {offsets = [3, 0], sizes = [1, 256], strides = [1, 1]} : vector<8x256xf32> to vector<1x256xf32>
    %cst_17 = arith.constant dense<0.000000e+00> : vector<1x256xf32>
    %69 = tpu.matmul %67, %8, %cst_17 {dimension_numbers = #tpu.dot_dimension_numbers<[1], [0], [0], [1], [0, 0, 1, 1], [], []>} : vector<1x64xf32>, vector<64x256xf32>, vector<1x256xf32> -> vector<1x256xf32>
    %70 = arith.addf %68, %69 : vector<1x256xf32>
    %71 = vector.extract_strided_slice %70 {offsets = [0, 0], sizes = [1, 192], strides = [1, 1]} : vector<1x256xf32> to vector<1x192xf32>
    %72 = arith.negf %71 : vector<1x192xf32>
    %73 = math.exp %72 : vector<1x192xf32>
    %cst_18 = arith.constant 1.000000e+00 : f32
    %74 = vector.broadcast %cst_18 : f32 to vector<1x192xf32>
    %75 = arith.addf %74, %73 : vector<1x192xf32>
    %76 = arith.divf %74, %75 : vector<1x192xf32>
    %77 = vector.extract_strided_slice %70 {offsets = [0, 192], sizes = [1, 64], strides = [1, 1]} : vector<1x256xf32> to vector<1x64xf32>
    %78 = math.tanh %77 : vector<1x64xf32>
    %79 = vector.extract_strided_slice %76 {offsets = [0, 0], sizes = [1, 64], strides = [1, 1]} : vector<1x192xf32> to vector<1x64xf32>
    %80 = vector.extract_strided_slice %76 {offsets = [0, 64], sizes = [1, 64], strides = [1, 1]} : vector<1x192xf32> to vector<1x64xf32>
    %81 = vector.extract_strided_slice %76 {offsets = [0, 128], sizes = [1, 64], strides = [1, 1]} : vector<1x192xf32> to vector<1x64xf32>
    %82 = arith.mulf %80, %65 : vector<1x64xf32>
    %83 = arith.mulf %79, %78 : vector<1x64xf32>
    %84 = arith.addf %82, %83 : vector<1x64xf32>
    %85 = math.tanh %84 : vector<1x64xf32>
    %86 = arith.mulf %81, %85 : vector<1x64xf32>
    %87 = vector.extract_strided_slice %7 {offsets = [4, 0], sizes = [1, 256], strides = [1, 1]} : vector<8x256xf32> to vector<1x256xf32>
    %cst_19 = arith.constant dense<0.000000e+00> : vector<1x256xf32>
    %88 = tpu.matmul %86, %8, %cst_19 {dimension_numbers = #tpu.dot_dimension_numbers<[1], [0], [0], [1], [0, 0, 1, 1], [], []>} : vector<1x64xf32>, vector<64x256xf32>, vector<1x256xf32> -> vector<1x256xf32>
    %89 = arith.addf %87, %88 : vector<1x256xf32>
    %90 = vector.extract_strided_slice %89 {offsets = [0, 0], sizes = [1, 192], strides = [1, 1]} : vector<1x256xf32> to vector<1x192xf32>
    %91 = arith.negf %90 : vector<1x192xf32>
    %92 = math.exp %91 : vector<1x192xf32>
    %cst_20 = arith.constant 1.000000e+00 : f32
    %93 = vector.broadcast %cst_20 : f32 to vector<1x192xf32>
    %94 = arith.addf %93, %92 : vector<1x192xf32>
    %95 = arith.divf %93, %94 : vector<1x192xf32>
    %96 = vector.extract_strided_slice %89 {offsets = [0, 192], sizes = [1, 64], strides = [1, 1]} : vector<1x256xf32> to vector<1x64xf32>
    %97 = math.tanh %96 : vector<1x64xf32>
    %98 = vector.extract_strided_slice %95 {offsets = [0, 0], sizes = [1, 64], strides = [1, 1]} : vector<1x192xf32> to vector<1x64xf32>
    %99 = vector.extract_strided_slice %95 {offsets = [0, 64], sizes = [1, 64], strides = [1, 1]} : vector<1x192xf32> to vector<1x64xf32>
    %100 = vector.extract_strided_slice %95 {offsets = [0, 128], sizes = [1, 64], strides = [1, 1]} : vector<1x192xf32> to vector<1x64xf32>
    %101 = arith.mulf %99, %84 : vector<1x64xf32>
    %102 = arith.mulf %98, %97 : vector<1x64xf32>
    %103 = arith.addf %101, %102 : vector<1x64xf32>
    %104 = math.tanh %103 : vector<1x64xf32>
    %105 = arith.mulf %100, %104 : vector<1x64xf32>
    %106 = vector.extract_strided_slice %7 {offsets = [5, 0], sizes = [1, 256], strides = [1, 1]} : vector<8x256xf32> to vector<1x256xf32>
    %cst_21 = arith.constant dense<0.000000e+00> : vector<1x256xf32>
    %107 = tpu.matmul %105, %8, %cst_21 {dimension_numbers = #tpu.dot_dimension_numbers<[1], [0], [0], [1], [0, 0, 1, 1], [], []>} : vector<1x64xf32>, vector<64x256xf32>, vector<1x256xf32> -> vector<1x256xf32>
    %108 = arith.addf %106, %107 : vector<1x256xf32>
    %109 = vector.extract_strided_slice %108 {offsets = [0, 0], sizes = [1, 192], strides = [1, 1]} : vector<1x256xf32> to vector<1x192xf32>
    %110 = arith.negf %109 : vector<1x192xf32>
    %111 = math.exp %110 : vector<1x192xf32>
    %cst_22 = arith.constant 1.000000e+00 : f32
    %112 = vector.broadcast %cst_22 : f32 to vector<1x192xf32>
    %113 = arith.addf %112, %111 : vector<1x192xf32>
    %114 = arith.divf %112, %113 : vector<1x192xf32>
    %115 = vector.extract_strided_slice %108 {offsets = [0, 192], sizes = [1, 64], strides = [1, 1]} : vector<1x256xf32> to vector<1x64xf32>
    %116 = math.tanh %115 : vector<1x64xf32>
    %117 = vector.extract_strided_slice %114 {offsets = [0, 0], sizes = [1, 64], strides = [1, 1]} : vector<1x192xf32> to vector<1x64xf32>
    %118 = vector.extract_strided_slice %114 {offsets = [0, 64], sizes = [1, 64], strides = [1, 1]} : vector<1x192xf32> to vector<1x64xf32>
    %119 = vector.extract_strided_slice %114 {offsets = [0, 128], sizes = [1, 64], strides = [1, 1]} : vector<1x192xf32> to vector<1x64xf32>
    %120 = arith.mulf %118, %103 : vector<1x64xf32>
    %121 = arith.mulf %117, %116 : vector<1x64xf32>
    %122 = arith.addf %120, %121 : vector<1x64xf32>
    %123 = math.tanh %122 : vector<1x64xf32>
    %124 = arith.mulf %119, %123 : vector<1x64xf32>
    %125 = vector.extract_strided_slice %7 {offsets = [6, 0], sizes = [1, 256], strides = [1, 1]} : vector<8x256xf32> to vector<1x256xf32>
    %cst_23 = arith.constant dense<0.000000e+00> : vector<1x256xf32>
    %126 = tpu.matmul %124, %8, %cst_23 {dimension_numbers = #tpu.dot_dimension_numbers<[1], [0], [0], [1], [0, 0, 1, 1], [], []>} : vector<1x64xf32>, vector<64x256xf32>, vector<1x256xf32> -> vector<1x256xf32>
    %127 = arith.addf %125, %126 : vector<1x256xf32>
    %128 = vector.extract_strided_slice %127 {offsets = [0, 0], sizes = [1, 192], strides = [1, 1]} : vector<1x256xf32> to vector<1x192xf32>
    %129 = arith.negf %128 : vector<1x192xf32>
    %130 = math.exp %129 : vector<1x192xf32>
    %cst_24 = arith.constant 1.000000e+00 : f32
    %131 = vector.broadcast %cst_24 : f32 to vector<1x192xf32>
    %132 = arith.addf %131, %130 : vector<1x192xf32>
    %133 = arith.divf %131, %132 : vector<1x192xf32>
    %134 = vector.extract_strided_slice %127 {offsets = [0, 192], sizes = [1, 64], strides = [1, 1]} : vector<1x256xf32> to vector<1x64xf32>
    %135 = math.tanh %134 : vector<1x64xf32>
    %136 = vector.extract_strided_slice %133 {offsets = [0, 0], sizes = [1, 64], strides = [1, 1]} : vector<1x192xf32> to vector<1x64xf32>
    %137 = vector.extract_strided_slice %133 {offsets = [0, 64], sizes = [1, 64], strides = [1, 1]} : vector<1x192xf32> to vector<1x64xf32>
    %138 = vector.extract_strided_slice %133 {offsets = [0, 128], sizes = [1, 64], strides = [1, 1]} : vector<1x192xf32> to vector<1x64xf32>
    %139 = arith.mulf %137, %122 : vector<1x64xf32>
    %140 = arith.mulf %136, %135 : vector<1x64xf32>
    %141 = arith.addf %139, %140 : vector<1x64xf32>
    %142 = math.tanh %141 : vector<1x64xf32>
    %143 = arith.mulf %138, %142 : vector<1x64xf32>
    %144 = vector.extract_strided_slice %7 {offsets = [7, 0], sizes = [1, 256], strides = [1, 1]} : vector<8x256xf32> to vector<1x256xf32>
    %cst_25 = arith.constant dense<0.000000e+00> : vector<1x256xf32>
    %145 = tpu.matmul %143, %8, %cst_25 {dimension_numbers = #tpu.dot_dimension_numbers<[1], [0], [0], [1], [0, 0, 1, 1], [], []>} : vector<1x64xf32>, vector<64x256xf32>, vector<1x256xf32> -> vector<1x256xf32>
    %146 = arith.addf %144, %145 : vector<1x256xf32>
    %147 = vector.extract_strided_slice %146 {offsets = [0, 0], sizes = [1, 192], strides = [1, 1]} : vector<1x256xf32> to vector<1x192xf32>
    %148 = arith.negf %147 : vector<1x192xf32>
    %149 = math.exp %148 : vector<1x192xf32>
    %cst_26 = arith.constant 1.000000e+00 : f32
    %150 = vector.broadcast %cst_26 : f32 to vector<1x192xf32>
    %151 = arith.addf %150, %149 : vector<1x192xf32>
    %152 = arith.divf %150, %151 : vector<1x192xf32>
    %153 = vector.extract_strided_slice %146 {offsets = [0, 192], sizes = [1, 64], strides = [1, 1]} : vector<1x256xf32> to vector<1x64xf32>
    %154 = math.tanh %153 : vector<1x64xf32>
    %155 = vector.extract_strided_slice %152 {offsets = [0, 0], sizes = [1, 64], strides = [1, 1]} : vector<1x192xf32> to vector<1x64xf32>
    %156 = vector.extract_strided_slice %152 {offsets = [0, 64], sizes = [1, 64], strides = [1, 1]} : vector<1x192xf32> to vector<1x64xf32>
    %157 = vector.extract_strided_slice %152 {offsets = [0, 128], sizes = [1, 64], strides = [1, 1]} : vector<1x192xf32> to vector<1x64xf32>
    %158 = arith.mulf %156, %141 : vector<1x64xf32>
    %159 = arith.mulf %155, %154 : vector<1x64xf32>
    %160 = arith.addf %158, %159 : vector<1x64xf32>
    %161 = math.tanh %160 : vector<1x64xf32>
    %162 = arith.mulf %157, %161 : vector<1x64xf32>
    %163 = tpu.concatenate %29, %48, %67, %86, %105, %124, %143, %162 in 0 : vector<1x64xf32>, vector<1x64xf32>, vector<1x64xf32>, vector<1x64xf32>, vector<1x64xf32>, vector<1x64xf32>, vector<1x64xf32>, vector<1x64xf32> -> vector<8x64xf32>
    %c0_27 = arith.constant 0 : index
    %c0_28 = arith.constant 0 : index
    %164 = vector.load %arg5[%c0_27, %c0_28] : memref<2x64xf32, #tpu.memory_space<vmem>>, vector<2x64xf32>
    %cst_29 = arith.constant dense<0.000000e+00> : vector<64xf32>
    %165 = vector.multi_reduction <add>, %163, %cst_29 [0] : vector<8x64xf32> to vector<64xf32>
    %166 = vector.shape_cast %165 : vector<64xf32> to vector<1x64xf32>
    %cst_30 = arith.constant 8.000000e+00 : f32
    %167 = vector.broadcast %cst_30 : f32 to vector<1x64xf32>
    %168 = arith.divf %166, %167 : vector<1x64xf32>
    %169 = vector.broadcast %168 : vector<1x64xf32> to vector<8x64xf32>
    %170 = arith.subf %163, %169 : vector<8x64xf32>
    %171 = arith.mulf %170, %170 : vector<8x64xf32>
    %cst_31 = arith.constant dense<0.000000e+00> : vector<64xf32>
    %172 = vector.multi_reduction <add>, %171, %cst_31 [0] : vector<8x64xf32> to vector<64xf32>
    %173 = vector.shape_cast %172 : vector<64xf32> to vector<1x64xf32>
    %cst_32 = arith.constant 8.000000e+00 : f32
    %174 = vector.broadcast %cst_32 : f32 to vector<1x64xf32>
    %175 = arith.divf %173, %174 : vector<1x64xf32>
    %176 = vector.broadcast %168 : vector<1x64xf32> to vector<8x64xf32>
    %177 = arith.subf %163, %176 : vector<8x64xf32>
    %cst_33 = arith.constant 9.99999974E-6 : f32
    %178 = vector.broadcast %cst_33 : f32 to vector<1x64xf32>
    %179 = arith.addf %175, %178 : vector<1x64xf32>
    %180 = math.rsqrt %179 : vector<1x64xf32>
    %181 = vector.broadcast %180 : vector<1x64xf32> to vector<8x64xf32>
    %182 = arith.mulf %177, %181 : vector<8x64xf32>
    %183 = vector.extract_strided_slice %164 {offsets = [0, 0], sizes = [1, 64], strides = [1, 1]} : vector<2x64xf32> to vector<1x64xf32>
    %184 = vector.broadcast %183 : vector<1x64xf32> to vector<8x64xf32>
    %185 = arith.mulf %182, %184 : vector<8x64xf32>
    %186 = vector.extract_strided_slice %164 {offsets = [1, 0], sizes = [1, 64], strides = [1, 1]} : vector<2x64xf32> to vector<1x64xf32>
    %187 = vector.broadcast %186 : vector<1x64xf32> to vector<8x64xf32>
    %188 = arith.addf %185, %187 : vector<8x64xf32>
    %c0_34 = arith.constant 0 : index
    %c0_35 = arith.constant 0 : index
    %189 = vector.load %arg6[%c0_34, %c0_35] : memref<64x32xf32, #tpu.memory_space<vmem>>, vector<64x32xf32>
    %cst_36 = arith.constant dense<0.000000e+00> : vector<8x32xf32>
    %190 = tpu.matmul %188, %189, %cst_36 {dimension_numbers = #tpu.dot_dimension_numbers<[1], [0], [0], [1], [0, 0, 1, 1], [], []>} : vector<8x64xf32>, vector<64x32xf32>, vector<8x32xf32> -> vector<8x32xf32>
    %c0_37 = arith.constant 0 : index
    %c0_38 = arith.constant 0 : index
    %191 = vector.load %arg7[%c0_37, %c0_38] : memref<1x32xf32, #tpu.memory_space<vmem>>, vector<1x32xf32>
    %192 = vector.broadcast %191 : vector<1x32xf32> to vector<8x32xf32>
    %193 = arith.addf %190, %192 : vector<8x32xf32>
    %cst_39 = arith.constant 0.000000e+00 : f32
    %194 = vector.broadcast %cst_39 : f32 to vector<8x32xf32>
    %195 = arith.maximumf %193, %194 : vector<8x32xf32>
    %c0_40 = arith.constant 0 : index
    %c0_41 = arith.constant 0 : index
    %196 = vector.load %arg8[%c0_40, %c0_41] : memref<32x128xf32, #tpu.memory_space<vmem>>, vector<32x128xf32>
    %cst_42 = arith.constant dense<0.000000e+00> : vector<8x128xf32>
    %197 = tpu.matmul %195, %196, %cst_42 {dimension_numbers = #tpu.dot_dimension_numbers<[1], [0], [0], [1], [0, 0, 1, 1], [], []>} : vector<8x32xf32>, vector<32x128xf32>, vector<8x128xf32> -> vector<8x128xf32>
    %c0_43 = arith.constant 0 : index
    %c0_44 = arith.constant 0 : index
    %198 = vector.load %arg9[%c0_43, %c0_44] : memref<1x128xf32, #tpu.memory_space<vmem>>, vector<1x128xf32>
    %199 = vector.broadcast %198 : vector<1x128xf32> to vector<8x128xf32>
    %200 = arith.addf %197, %199 : vector<8x128xf32>
    %c0_45 = arith.constant 0 : index
    %c0_46 = arith.constant 0 : index
    %201 = vector.load %arg10[%c0_45, %c0_46] : memref<8x128xf32, #tpu.memory_space<vmem>>, vector<8x128xf32>
    tpu.vector_store %arg10[%c0_45, %c0_46], %200 {strides = array<i32>} : memref<8x128xf32, #tpu.memory_space<vmem>>, vector<8x128xf32>,
    return
  }
}

</mosaic_0001>

<bundles_post_ra>
// kernel: tpu_custom_call.1
= control target key start
LH: loop header
LB: loop body
LE: loop exit
PB: predicated region body
PF: predicated region fallthrough
CT: control target
= control target key end

     0   :  { %15 = vsyncpa [#allocation3], 0  ;;  %s1953_s0 = inlined_call_operand.vmem [shape: f32[8,12], index: 0, kind: input, shape index: {}]   ;;  %s1954_s1 = inlined_call_operand.vmem [shape: f32[8,10], index: 1, kind: input, shape index: {}]   ;;  %s1955_s2 = inlined_call_operand.vmem [shape: f32[22,256], index: 2, kind: input, shape index: {}]   ;;  %s1956_s3 = inlined_call_operand.hbm [shape: f32[64,256], index: 3, kind: input, shape index: {}]   ;;  %s1957_s4 = inlined_call_operand.vmem [shape: f32[1,256], index: 4, kind: input, shape index: {}]   ;;  %s1958_s5 = inlined_call_operand.vmem [shape: f32[2,64], index: 5, kind: input, shape index: {}]   ;;  %s1959_s6 = inlined_call_operand.vmem [shape: f32[64,32], index: 6, kind: input, shape index: {}]   ;;  %s1960_s7 = inlined_call_operand.vmem [shape: f32[1,32], index: 7, kind: input, shape index: {}]   ;;  %s1961_s8 = inlined_call_operand.vmem [shape: f32[32,128], index: 8, kind: input, shape index: {}]   ;;  %s1962_s9 = inlined_call_operand.vmem [shape: f32[1,128], index: 9, kind: input, shape index: {}]   ;;  %s1963_s10 = inlined_call_operand.hbm [shape: f32[8,128], index: 10, kind: output, shape index: {}]  }
   0x1   :  { %16 = vsyncpa [#allocation4], 0  ;;  %s1552_s13 = smov [#allocation2]  }
   0x2   :  { %s28_s14 = sshll.u32 %s1552_s13, 4  ;;  %s29_s14 = int_to_ptr.vmem [resolvable:$true] %s28_s14 }
   0x3   :  { %s1516_s15 = scalar_lea.vmem %s29_s14, 2048  ;;  %p1521_p1 = scmp.lt.s32.totalorder %s29_s14, %s29_s14 }
   0x4   :  { %p1517_p0 = scmp.ne.s32.totalorder %s29_s14, %s1516_s15  ;;  %p1522_p2 = scmp.lt.s32.totalorder %s1516_s15, %s1516_s15 }
   0x6   :  { %p1523_p3 = por %p1522_p2, %p1521_p1 }
   0x8   :  { %p1524_p4 = pnand %p1523_p3, %p1517_p0 }
   0xa   :  { %1527 = shalt.err (!%p1524_p4)
}
   0xb   :  { %s1553_s16 = smov 256   ;;  %s1554_s17 = smov 16  }
   0xc   :  { %34 = dma.hbm_to_vmem [thread:$0]  %s1956_s3, 2048, %s29_s14, [#allocation3], %s1553_s16, %s1553_s16, %s1554_s17  }
   0xd   :  { %1548 = dma.done.wait [#allocation3], 2048  }
   0xe   :  { %1549 = vsyncadd [#allocation3], 4294965248  ;;  %v1555_v0 = vmov 0.0   ;;  %v51_v1 = vld [vmem:[%s1954_s1] sm:$0xff]  ;;  %v1623_v2 = vld [vmem:[#allocation2 + $0x78] sm:$0xff]  ;;  %s1556_s22 = smov 12   ;;  %v66_v27 = vlaneseq }
   0xf   :  { %151 = vmatprep.mubr.f32.mxu0 %v1555_v0  ;;  %242 = vmatprep.mubr.f32.mxu1 %v1555_v0  ;;  %v1625_v3 = vld [vmem:[#allocation2 + $0x70] sm:$0xff]  ;;  %v1628_v4 = vld [vmem:[#allocation2 + $0x68] sm:$0xff]  ;;  %v1630_v5 = vld [vmem:[#allocation2 + $0x60] sm:$0xff]  ;;  %vm80_vm0 = vcmask 1045504   ;;  %vm56_vm1 = vcmask 97280   ;;  %vm76_vm2 = vcmask 179200  }
  0x10   :  { %53 = vrot.lane.b32.xlu0 %v51_v1, %s1556_s22  ;;  %194 = vmatprep.subr.mxu1 %v1623_v2  ;;  %v1633_v6 = vld [vmem:[#allocation2 + $0x58] sm:$0xff]  ;;  %v1636_v7 = vld [vmem:[#allocation2 + $0x50] sm:$0xff]  ;;  %v63_v8 = vld [vmem:[%s1955_s2 + $0x28] sm:$0x3f]  ;;  %v1731_v28 = vshrl.u32 %v66_v27, 7  ;;  %s1557_s15 = smov 64  }
  0x11   :  { %195 = vmatpush1.msra.mxu1 %v1625_v3  ;;  %v1642_v9 = vld [vmem:[#allocation2 + $0x48] sm:$0xff]  ;;  %1328 = vmatprep.subr.msk.mxu0 %vm80_vm0, %v63_v8  ;;  %v62_v10 = vld [vmem:[%s1955_s2 + $0x20] sm:$0x3f]  ;;  %v61_v12 = vld [vmem:[%s1955_s2 + $0x18] sm:$0xff]  ;;  %vm174_vm3 = vcmask 523264   ;;  %vm1092_vm4 = vcmask 1040384  }
  0x12   :  { %196 = vmatprep.subr.mxu1 %v1628_v4  ;;  %v1649_v11 = vld [vmem:[#allocation2 + $0x40] sm:$0xff]  ;;  %1329 = vmatpush1.msk.msra.mxu0 %vm80_vm0, %v62_v10  ;;  %v60_v13 = vld [vmem:[%s1955_s2 + $0x10] sm:$0xff]  ;;  %v1659_v14 = vld [vmem:[#allocation2 + $0x38] sm:$0xff]  ;;  %v72_v29 = vsub.s32 1, %v1731_v28  ;;  %v68_v39 = vsub.s32 0, %v1731_v28  ;;  %vm1094_vm5 = vcmask 1041408  }
  0x13   :  { %197 = vmatpush1.msra.mxu1 %v1630_v5  ;;  %115 = vmatprep.subr.mxu0 %v61_v12  ;;  %v59_v15 = vld [vmem:[%s1955_s2 + $0x8] sm:$0xff]  ;;  %v1665_v16 = vld [vmem:[#allocation2 + $0x30] sm:$0xff]  ;;  %v58_v17 = vld [vmem:[%s1955_s2] sm:$0xff]  ;;  %vm1096_vm6 = vcmask 1042432   ;;  %vm1098_vm7 = vcmask 1043456   ;;  %vm1100_vm8 = vcmask 1044480  }
  0x14   :  { %198 = vmatprep.subr.mxu1 %v1633_v6  ;;  %116 = vmatpush1.msra.mxu0 %v60_v13  ;;  %v1671_v18 = vld [vmem:[#allocation2 + $0x28] sm:$0xff]  ;;  %v1674_v19 = vld [vmem:[#allocation2 + $0x20] sm:$0xff]  ;;  %v1677_v20 = vld [vmem:[#allocation2 + $0x18] sm:$0xff]  ;;  %vm1558_vm9 = vmmov 0   ;;  %vm1103_vm10 = vcmask 1046528   ;;  %vm1238_vm11 = vcmask 261120  }
  0x15   :  { %199 = vmatpush1.msra.mxu1 %v1636_v7  ;;  %117 = vmatprep.subr.mxu0 %v59_v15  ;;  %v1681_v21 = vld [vmem:[#allocation2 + $0x10] sm:$0xff]  ;;  %v1684_v22 = vld [vmem:[#allocation2 + $0x8] sm:$0xff]  ;;  %v1687_v23 = vld [vmem:[#allocation2] sm:$0xff]  ;;  %s1559_s18 = smov [#allocation5]  }
  0x16   :  { %200 = vmatprep.subr.mxu1 %v1642_v9  ;;  %118 = vmatpush1.msra.mxu0 %v58_v17  ;;  %v50_v24 = vld [vmem:[%s1953_s0] sm:$0xff]  ;;  %s1319_s19 = sshll.u32 %s1559_s18, 4  ;;  %s1320_s19 = int_to_ptr.vmem [resolvable:$true] %s1319_s19 }
  0x17   :  { %201 = vmatpush1.msra.mxu1 %v1649_v11  ;;  %300 = vmatprep.subr.mxu0 %v1623_v2  ;;  %v64_v30 = vld [vmem:[%s1957_s4] sm:$0x3]  ;;  %p1533_p6 = scmp.lt.s32.totalorder %s1320_s19, %s1320_s19 }
  0x18   :  { %202 = vmatprep.subr.mxu1 %v1659_v14  ;;  %v73_v31 = vrot.slane %v64_v30, %v72_v29  ;;  %v69_v40 = vrot.slane %v64_v30, %v68_v39  ;;  %v1227_v28 = vld [vmem:[%s1961_s8] sm:$0xff] }
  0x19   :  { %203 = vmatpush1.msra.mxu1 %v1665_v16 }
  0x1a   :  { %204 = vmatprep.subr.mxu1 %v1671_v18 }
  0x1b   :  { %205 = vmatpush1.msra.mxu1 %v1674_v19 }
  0x1c   :  { %206 = vmatprep.subr.mxu1 %v1677_v20 }
  0x1d   :  { %207 = vmatpush1.msra.mxu1 %v1681_v21 }
  0x1e   :  { %208 = vmatprep.subr.mxu1 %v1684_v22 }
  0x1f   :  { %209 = vmatpush1.msra.mxu1 %v1687_v23 }
  0x20   :  { %243 = vmatmul.mubr.f32.vlgmr.msra.gmra.mxu1 %v1555_v0  ;;  %416 = vmatprep.subr.mxu1 %v1623_v2 }
  0x21   :  { %417 = vmatpush1.msra.mxu1 %v1625_v3  ;;  %464 = vmatprep.mubr.f32.mxu1 %v1555_v0 }
  0x22   :  { %418 = vmatprep.subr.mxu1 %v1628_v4 }
  0x23   :  { %419 = vmatpush1.msra.mxu1 %v1630_v5 }
  0x24   :  { %420 = vmatprep.subr.mxu1 %v1633_v6 }
  0x25   :  { %421 = vmatpush1.msra.mxu1 %v1636_v7 }
  0x26   :  { %422 = vmatprep.subr.mxu1 %v1642_v9 }
  0x27   :  { %423 = vmatpush1.msra.mxu1 %v1649_v11 }
  0x28   :  { %424 = vmatprep.subr.mxu1 %v1659_v14 }
  0x29   :  { %425 = vmatpush1.msra.mxu1 %v1665_v16 }
  0x2a   :  { %426 = vmatprep.subr.mxu1 %v1671_v18 }
  0x2b   :  { %427 = vmatpush1.msra.mxu1 %v1674_v19 }
  0x2c   :  { %428 = vmatprep.subr.mxu1 %v1677_v20 }
  0x2d   :  { %429 = vmatpush1.msra.mxu1 %v1681_v21 }
  0x2e   :  { %430 = vmatprep.subr.mxu1 %v1684_v22 }
  0x2f   :  { %431 = vmatpush1.msra.mxu1 %v1687_v23 }
  0x30   :  { %648 = vmatprep.subr.mxu1 %v1623_v2 }
  0x82   :  { %v54_v25 = vpop.permute.xlu0 %53 }
  0x83   :  { %v57_v26 = vsel %vm56_vm1, %v50_v24, %v54_v25 }
  0x84   :  { %1330 = vmatmul.mubr.msk.f32.vlgmr.msra.gmra.mxu0 %vm76_vm2, %v57_v26 }
  0x85   :  { %301 = vmatpush1.msra.mxu0 %v1625_v3  ;;  %348 = vmatprep.mubr.f32.mxu0 %v1555_v0 }
  0x86   :  { %302 = vmatprep.subr.mxu0 %v1628_v4 }
  0x87   :  { %303 = vmatpush1.msra.mxu0 %v1630_v5 }
  0x88   :  { %304 = vmatprep.subr.mxu0 %v1633_v6 }
  0x89   :  { %305 = vmatpush1.msra.mxu0 %v1636_v7 }
  0x8a   :  { %306 = vmatprep.subr.mxu0 %v1642_v9 }
  0x8b   :  { %307 = vmatpush1.msra.mxu0 %v1649_v11 }
  0x8c   :  { %308 = vmatprep.subr.mxu0 %v1659_v14 }
  0x8d   :  { %309 = vmatpush1.msra.mxu0 %v1665_v16 }
  0x8e   :  { %310 = vmatprep.subr.mxu0 %v1671_v18 }
  0x8f   :  { %311 = vmatpush1.msra.mxu0 %v1674_v19 }
  0x90   :  { %312 = vmatprep.subr.mxu0 %v1677_v20 }
  0x91   :  { %313 = vmatpush1.msra.mxu0 %v1681_v21 }
  0x92   :  { %314 = vmatprep.subr.mxu0 %v1684_v22 }
  0x93   :  { %315 = vmatpush1.msra.mxu0 %v1687_v23 }
  0x94   :  { %532 = vmatprep.subr.mxu0 %v1623_v2 }
  0xe0   :  { %v244_v33 = vpop.f32.mrf.mxu1 }
  0xe2   :  { %v246_v36 = vpop.f32.mrf.mxu1 }
 0x144   :  { %v153_v32 = vpop.f32.mrf.mxu0 }
 0x145   :  { %v1746_v41 = vadd.f32 %v153_v32, %v69_v40 }
 0x146   :  { %v155_v34 = vpop.f32.mrf.mxu0 }
 0x147   :  { %v1739_v35 = vadd.f32 %v155_v34, %v73_v31  ;;  %v249_v42 = vadd.f32 %v244_v33, %v1746_v41 }
 0x149   :  { %v250_v37 = vadd.f32 %v246_v36, %v1739_v35  ;;  %v1331_v43 = vmul.f32 -1.442695, %v249_v42 }
 0x14b   :  { %1410 = vtanh.f32 %v250_v37  ;;  %v1332_v53 = vmul.f32 -1.442695, %v250_v37 }
 0x14c   :  { %1412 = vpow2.f32 %v1331_v43 }
 0x158   :  { %v1411_v38 = vpop.eup %1410 }
 0x159   :  { %266 = vrot.lane.b32.xlu0 %v1411_v38, %s1557_s15  ;;  %v1413_v44 = vpop.eup %1412 }
 0x15a   :  { %v257_v45 = vadd.f32 1.0, %v1413_v44 }
 0x15c   :  { %1414 = vrcp.f32 %v257_v45 }
 0x169   :  { %v1415_v46 = vpop.eup %1414 }
 0x16a   :  { %v264_v49 = vmul.f32 0.0, %v1415_v46 }
 0x1cb   :  { %v267_v47 = vpop.permute.xlu0 %266 }
 0x1cc   :  { %v269_v48 = vmul.f32 %v1415_v46, %v267_v47 }
 0x1ce   :  { %271 = vrot.lane.b32.xlu1 %v269_v48, %s1557_s15 }
 0x240   :  { %v272_v50 = vpop.permute.xlu1 %271 }
 0x241   :  { %v274_v51 = vadd.f32 %v272_v50, %v264_v49 }
 0x243   :  { %1416 = vtanh.f32 %v274_v51  ;;  %v377_v25 = vrot.slane %v274_v51, 7 }
 0x244   :  { %1418 = vpow2.f32 %v1332_v53 }
 0x250   :  { %v1417_v52 = vpop.eup %1416 }
 0x251   :  { %277 = vrot.lane.b32.xlu1 %v1417_v52, %s1557_s15  ;;  %v1419_v54 = vpop.eup %1418 }
 0x252   :  { %v258_v55 = vadd.f32 1.0, %v1419_v54 }
 0x254   :  { %1420 = vrcp.f32 %v258_v55 }
 0x261   :  { %v1421_v56 = vpop.eup %1420 }
 0x2c3   :  { %v278_v57 = vpop.permute.xlu1 %277 }
 0x2c4   :  { %v1751_v58 = vmul.f32 %v1421_v56, %v278_v57 }
 0x2c6   :  { %1333 = vmatmul.mubr.msk.f32.vlgmr.msra.gmra.mxu0 %vm174_vm3, %v1751_v58 }
 0x2c7   :  { %533 = vmatpush1.msra.mxu0 %v1625_v3  ;;  %580 = vmatprep.mubr.f32.mxu0 %v1555_v0 }
 0x2c8   :  { %534 = vmatprep.subr.mxu0 %v1628_v4 }
 0x2c9   :  { %535 = vmatpush1.msra.mxu0 %v1630_v5 }
 0x2ca   :  { %536 = vmatprep.subr.mxu0 %v1633_v6 }
 0x2cb   :  { %537 = vmatpush1.msra.mxu0 %v1636_v7 }
 0x2cc   :  { %538 = vmatprep.subr.mxu0 %v1642_v9 }
 0x2cd   :  { %539 = vmatpush1.msra.mxu0 %v1649_v11 }
 0x2ce   :  { %540 = vmatprep.subr.mxu0 %v1659_v14 }
 0x2cf   :  { %541 = vmatpush1.msra.mxu0 %v1665_v16 }
 0x2d0   :  { %542 = vmatprep.subr.mxu0 %v1671_v18 }
 0x2d1   :  { %543 = vmatpush1.msra.mxu0 %v1674_v19 }
 0x2d2   :  { %544 = vmatprep.subr.mxu0 %v1677_v20 }
 0x2d3   :  { %545 = vmatpush1.msra.mxu0 %v1681_v21 }
 0x2d4   :  { %546 = vmatprep.subr.mxu0 %v1684_v22 }
 0x2d5   :  { %547 = vmatpush1.msra.mxu0 %v1687_v23 }
 0x2d6   :  { %764 = vmatprep.subr.mxu0 %v1623_v2 }
 0x386   :  { %v350_v59 = vpop.f32.mrf.mxu0 }
 0x387   :  { %v357_v1 = vrot.slane %v350_v59, 7 }
 0x388   :  { %v352_v60 = vpop.f32.mrf.mxu0 }
 0x389   :  { %v358_v61 = vrot.slane %v352_v60, 7  ;;  %v361_v8 = vadd.f32 %v357_v1, %v1746_v41 }
 0x38b   :  { %v362_v62 = vadd.f32 %v358_v61, %v1739_v35  ;;  %v1334_v10 = vmul.f32 -1.442695, %v361_v8 }
 0x38d   :  { %1422 = vtanh.f32 %v362_v62  ;;  %v1335_v32 = vmul.f32 -1.442695, %v362_v62 }
 0x38e   :  { %1424 = vpow2.f32 %v1334_v10 }
 0x39a   :  { %v1423_v63 = vpop.eup %1422 }
 0x39b   :  { %381 = vrot.lane.b32.xlu0 %v1423_v63, %s1557_s15  ;;  %v1425_v12 = vpop.eup %1424 }
 0x39c   :  { %v369_v13 = vadd.f32 1.0, %v1425_v12 }
 0x39e   :  { %1426 = vrcp.f32 %v369_v13 }
 0x3ab   :  { %v1427_v15 = vpop.eup %1426 }
 0x3ac   :  { %v379_v26 = vmul.f32 %v1427_v15, %v377_v25 }
 0x40d   :  { %v382_v17 = vpop.permute.xlu0 %381 }
 0x40e   :  { %v384_v24 = vmul.f32 %v1427_v15, %v382_v17 }
 0x410   :  { %386 = vrot.lane.b32.xlu1 %v384_v24, %s1557_s15 }
 0x482   :  { %v387_v27 = vpop.permute.xlu1 %386 }
 0x483   :  { %v389_v30 = vadd.f32 %v387_v27, %v379_v26 }
 0x485   :  { %1428 = vtanh.f32 %v389_v30  ;;  %v493_v55 = vrot.slane %v389_v30, 7 }
 0x486   :  { %1430 = vpow2.f32 %v1335_v32 }
 0x492   :  { %v1429_v31 = vpop.eup %1428 }
 0x493   :  { %392 = vrot.lane.b32.xlu0 %v1429_v31, %s1557_s15  ;;  %v1431_v33 = vpop.eup %1430 }
 0x494   :  { %v370_v34 = vadd.f32 1.0, %v1431_v33 }
 0x496   :  { %1432 = vrcp.f32 %v370_v34 }
 0x4a3   :  { %v1433_v36 = vpop.eup %1432 }
 0x505   :  { %v393_v37 = vpop.permute.xlu0 %392 }
 0x506   :  { %v395_v38 = vmul.f32 %v1433_v36, %v393_v37 }
 0x508   :  { %v397_v40 = vrot.slane %v395_v38, 1  ;;  %v1093_v12 = vsel %vm1092_vm4, %v1751_v58, %v395_v38 }
 0x50a   :  { %1336 = vmatmul.mubr.msk.f32.vlgmr.msra.gmra.mxu1 %vm174_vm3, %v397_v40 }
 0x50b   :  { %649 = vmatpush1.msra.mxu1 %v1625_v3  ;;  %696 = vmatprep.mubr.f32.mxu1 %v1555_v0 }
 0x50c   :  { %650 = vmatprep.subr.mxu1 %v1628_v4 }
 0x50d   :  { %651 = vmatpush1.msra.mxu1 %v1630_v5 }
 0x50e   :  { %652 = vmatprep.subr.mxu1 %v1633_v6 }
 0x50f   :  { %653 = vmatpush1.msra.mxu1 %v1636_v7 }
 0x510   :  { %654 = vmatprep.subr.mxu1 %v1642_v9 }
 0x511   :  { %655 = vmatpush1.msra.mxu1 %v1649_v11 }
 0x512   :  { %656 = vmatprep.subr.mxu1 %v1659_v14 }
 0x513   :  { %657 = vmatpush1.msra.mxu1 %v1665_v16 }
 0x514   :  { %658 = vmatprep.subr.mxu1 %v1671_v18 }
 0x515   :  { %659 = vmatpush1.msra.mxu1 %v1674_v19 }
 0x516   :  { %660 = vmatprep.subr.mxu1 %v1677_v20 }
 0x517   :  { %661 = vmatpush1.msra.mxu1 %v1681_v21 }
 0x518   :  { %662 = vmatprep.subr.mxu1 %v1684_v22 }
 0x519   :  { %663 = vmatpush1.msra.mxu1 %v1687_v23 }
 0x51a   :  { %880 = vmatprep.subr.mxu1 %v1623_v2 }
 0x5ca   :  { %v466_v42 = vpop.f32.mrf.mxu1 }
 0x5cb   :  { %v473_v47 = vrot.slane %v466_v42, 6 }
 0x5cc   :  { %v468_v43 = vpop.f32.mrf.mxu1 }
 0x5cd   :  { %v474_v44 = vrot.slane %v468_v43, 6  ;;  %v477_v48 = vadd.f32 %v473_v47, %v1746_v41 }
 0x5cf   :  { %v478_v45 = vadd.f32 %v474_v44, %v1739_v35  ;;  %v1337_v49 = vmul.f32 -1.442695, %v477_v48 }
 0x5d1   :  { %1434 = vtanh.f32 %v478_v45  ;;  %v1338_v61 = vmul.f32 -1.442695, %v478_v45 }
 0x5d2   :  { %1436 = vpow2.f32 %v1337_v49 }
 0x5de   :  { %v1435_v46 = vpop.eup %1434 }
 0x5df   :  { %497 = vrot.lane.b32.xlu1 %v1435_v46, %s1557_s15  ;;  %v1437_v50 = vpop.eup %1436 }
 0x5e0   :  { %v485_v51 = vadd.f32 1.0, %v1437_v50 }
 0x5e2   :  { %1438 = vrcp.f32 %v485_v51 }
 0x5ef   :  { %v1439_v52 = vpop.eup %1438 }
 0x5f0   :  { %v495_v56 = vmul.f32 %v1439_v52, %v493_v55 }
 0x651   :  { %v498_v53 = vpop.permute.xlu1 %497 }
 0x652   :  { %v500_v54 = vmul.f32 %v1439_v52, %v498_v53 }
 0x654   :  { %502 = vrot.lane.b32.xlu0 %v500_v54, %s1557_s15 }
 0x6c6   :  { %v503_v57 = vpop.permute.xlu0 %502 }
 0x6c7   :  { %v505_v59 = vadd.f32 %v503_v57, %v495_v56 }
 0x6c9   :  { %1440 = vtanh.f32 %v505_v59  ;;  %v609_v37 = vrot.slane %v505_v59, 7 }
 0x6ca   :  { %1442 = vpow2.f32 %v1338_v61 }
 0x6d6   :  { %v1441_v60 = vpop.eup %1440 }
 0x6d7   :  { %508 = vrot.lane.b32.xlu1 %v1441_v60, %s1557_s15  ;;  %v1443_v62 = vpop.eup %1442 }
 0x6d8   :  { %v486_v63 = vadd.f32 1.0, %v1443_v62 }
 0x6da   :  { %1444 = vrcp.f32 %v486_v63 }
 0x6e7   :  { %v1445_v1 = vpop.eup %1444 }
 0x749   :  { %v509_v8 = vpop.permute.xlu1 %508 }
 0x74a   :  { %v511_v10 = vmul.f32 %v1445_v1, %v509_v8 }
 0x74c   :  { %v513_v13 = vrot.slane %v511_v10, 2  ;;  %v1095_v15 = vsel %vm1094_vm5, %v1093_v12, %v511_v10 }
 0x74e   :  { %1339 = vmatmul.mubr.msk.f32.vlgmr.msra.gmra.mxu0 %vm174_vm3, %v513_v13 }
 0x74f   :  { %765 = vmatpush1.msra.mxu0 %v1625_v3  ;;  %812 = vmatprep.mubr.f32.mxu0 %v1555_v0 }
 0x750   :  { %766 = vmatprep.subr.mxu0 %v1628_v4 }
 0x751   :  { %767 = vmatpush1.msra.mxu0 %v1630_v5 }
 0x752   :  { %768 = vmatprep.subr.mxu0 %v1633_v6 }
 0x753   :  { %769 = vmatpush1.msra.mxu0 %v1636_v7 }
 0x754   :  { %770 = vmatprep.subr.mxu0 %v1642_v9 }
 0x755   :  { %771 = vmatpush1.msra.mxu0 %v1649_v11 }
 0x756   :  { %772 = vmatprep.subr.mxu0 %v1659_v14 }
 0x757   :  { %773 = vmatpush1.msra.mxu0 %v1665_v16 }
 0x758   :  { %774 = vmatprep.subr.mxu0 %v1671_v18 }
 0x759   :  { %775 = vmatpush1.msra.mxu0 %v1674_v19 }
 0x75a   :  { %776 = vmatprep.subr.mxu0 %v1677_v20 }
 0x75b   :  { %777 = vmatpush1.msra.mxu0 %v1681_v21 }
 0x75c   :  { %778 = vmatprep.subr.mxu0 %v1684_v22 }
 0x75d   :  { %779 = vmatpush1.msra.mxu0 %v1687_v23 }
 0x75e   :  { %996 = vmatprep.subr.mxu0 %v1623_v2 }
 0x80e   :  { %v582_v58 = vpop.f32.mrf.mxu0 }
 0x80f   :  { %v589_v27 = vrot.slane %v582_v58, 5 }
 0x810   :  { %v584_v17 = vpop.f32.mrf.mxu0 }
 0x811   :  { %v590_v24 = vrot.slane %v584_v17, 5  ;;  %v593_v30 = vadd.f32 %v589_v27, %v1746_v41 }
 0x813   :  { %v594_v25 = vadd.f32 %v590_v24, %v1739_v35  ;;  %v1340_v31 = vmul.f32 -1.442695, %v593_v30 }
 0x815   :  { %1446 = vtanh.f32 %v594_v25  ;;  %v1341_v44 = vmul.f32 -1.442695, %v594_v25 }
 0x816   :  { %1448 = vpow2.f32 %v1340_v31 }
 0x822   :  { %v1447_v26 = vpop.eup %1446 }
 0x823   :  { %613 = vrot.lane.b32.xlu0 %v1447_v26, %s1557_s15  ;;  %v1449_v32 = vpop.eup %1448 }
 0x824   :  { %v601_v33 = vadd.f32 1.0, %v1449_v32 }
 0x826   :  { %1450 = vrcp.f32 %v601_v33 }
 0x833   :  { %v1451_v34 = vpop.eup %1450 }
 0x834   :  { %v611_v38 = vmul.f32 %v1451_v34, %v609_v37 }
 0x895   :  { %v614_v36 = vpop.permute.xlu0 %613 }
 0x896   :  { %v616_v2 = vmul.f32 %v1451_v34, %v614_v36 }
 0x898   :  { %618 = vrot.lane.b32.xlu1 %v616_v2, %s1557_s15 }
 0x90a   :  { %v619_v40 = vpop.permute.xlu1 %618 }
 0x90b   :  { %v621_v42 = vadd.f32 %v619_v40, %v611_v38 }
 0x90d   :  { %1452 = vtanh.f32 %v621_v42  ;;  %v725_v10 = vrot.slane %v621_v42, 7 }
 0x90e   :  { %1454 = vpow2.f32 %v1341_v44 }
 0x91a   :  { %v1453_v43 = vpop.eup %1452 }
 0x91b   :  { %624 = vrot.lane.b32.xlu0 %v1453_v43, %s1557_s15  ;;  %v1455_v45 = vpop.eup %1454 }
 0x91c   :  { %v602_v46 = vadd.f32 1.0, %v1455_v45 }
 0x91e   :  { %1456 = vrcp.f32 %v602_v46 }
 0x92b   :  { %v1457_v47 = vpop.eup %1456 }
 0x98d   :  { %v625_v48 = vpop.permute.xlu0 %624 }
 0x98e   :  { %v627_v49 = vmul.f32 %v1457_v47, %v625_v48 }
 0x990   :  { %v629_v50 = vrot.slane %v627_v49, 3  ;;  %v1097_v51 = vsel %vm1096_vm6, %v1095_v15, %v627_v49 }
 0x992   :  { %1342 = vmatmul.mubr.msk.f32.vlgmr.msra.gmra.mxu1 %vm174_vm3, %v629_v50 }
 0x993   :  { %881 = vmatpush1.msra.mxu1 %v1625_v3  ;;  %928 = vmatprep.mubr.f32.mxu1 %v1555_v0 }
 0x994   :  { %882 = vmatprep.subr.mxu1 %v1628_v4 }
 0x995   :  { %883 = vmatpush1.msra.mxu1 %v1630_v5 }
 0x996   :  { %884 = vmatprep.subr.mxu1 %v1633_v6 }
 0x997   :  { %885 = vmatpush1.msra.mxu1 %v1636_v7 }
 0x998   :  { %886 = vmatprep.subr.mxu1 %v1642_v9 }
 0x999   :  { %887 = vmatpush1.msra.mxu1 %v1649_v11 }
 0x99a   :  { %888 = vmatprep.subr.mxu1 %v1659_v14 }
 0x99b   :  { %889 = vmatpush1.msra.mxu1 %v1665_v16 }
 0x99c   :  { %890 = vmatprep.subr.mxu1 %v1671_v18 }
 0x99d   :  { %891 = vmatpush1.msra.mxu1 %v1674_v19 }
 0x99e   :  { %892 = vmatprep.subr.mxu1 %v1677_v20 }
 0x99f   :  { %893 = vmatpush1.msra.mxu1 %v1681_v21 }
 0x9a0   :  { %894 = vmatprep.subr.mxu1 %v1684_v22 }
 0x9a1   :  { %895 = vmatpush1.msra.mxu1 %v1687_v23 }
 0x9a2   :  { %1372 = vmatprep.subr.mxu1 %v1555_v0 }
 0xa52   :  { %v698_v52 = vpop.f32.mrf.mxu1 }
 0xa53   :  { %v705_v57 = vrot.slane %v698_v52, 4 }
 0xa54   :  { %v700_v53 = vpop.f32.mrf.mxu1 }
 0xa55   :  { %v706_v54 = vrot.slane %v700_v53, 4  ;;  %v709_v59 = vadd.f32 %v705_v57, %v1746_v41 }
 0xa57   :  { %v710_v55 = vadd.f32 %v706_v54, %v1739_v35  ;;  %v1343_v60 = vmul.f32 -1.442695, %v709_v59 }
 0xa59   :  { %1458 = vtanh.f32 %v710_v55  ;;  %v1344_v17 = vmul.f32 -1.442695, %v710_v55 }
 0xa5a   :  { %1460 = vpow2.f32 %v1343_v60 }
 0xa66   :  { %v1459_v56 = vpop.eup %1458 }
 0xa67   :  { %729 = vrot.lane.b32.xlu1 %v1459_v56, %s1557_s15  ;;  %v1461_v61 = vpop.eup %1460 }
 0xa68   :  { %v717_v62 = vadd.f32 1.0, %v1461_v61 }
 0xa6a   :  { %1462 = vrcp.f32 %v717_v62 }
 0xa77   :  { %v1463_v63 = vpop.eup %1462 }
 0xa78   :  { %v727_v12 = vmul.f32 %v1463_v63, %v725_v10 }
 0xad9   :  { %v730_v1 = vpop.permute.xlu1 %729 }
 0xada   :  { %v732_v8 = vmul.f32 %v1463_v63, %v730_v1 }
 0xadc   :  { %734 = vrot.lane.b32.xlu0 %v732_v8, %s1557_s15 }
 0xb4e   :  { %v735_v13 = vpop.permute.xlu0 %734 }
 0xb4f   :  { %v737_v15 = vadd.f32 %v735_v13, %v727_v12 }
 0xb51   :  { %1464 = vtanh.f32 %v737_v15 }
 0xb52   :  { %1466 = vpow2.f32 %v1344_v17 }
 0xb5e   :  { %v1465_v58 = vpop.eup %1464 }
 0xb5f   :  { %740 = vrot.lane.b32.xlu1 %v1465_v58, %s1557_s15  ;;  %v1467_v24 = vpop.eup %1466 }
 0xb60   :  { %v718_v25 = vadd.f32 1.0, %v1467_v24 }
 0xb62   :  { %1468 = vrcp.f32 %v718_v25 }
 0xb6f   :  { %v1469_v26 = vpop.eup %1468 }
 0xbd1   :  { %v741_v27 = vpop.permute.xlu1 %740 }
 0xbd2   :  { %v743_v30 = vmul.f32 %v1469_v26, %v741_v27 }
 0xbd4   :  { %v745_v31 = vrot.slane %v743_v30, 4  ;;  %v1099_v32 = vsel %vm1098_vm7, %v1097_v51, %v743_v30 }
 0xbd6   :  { %1345 = vmatmul.mubr.msk.f32.vlgmr.msra.gmra.mxu0 %vm174_vm3, %v745_v31 }
 0xbd7   :  { %997 = vmatpush1.msra.mxu0 %v1625_v3  ;;  %1044 = vmatprep.mubr.f32.mxu0 %v1555_v0 }
 0xbd8   :  { %998 = vmatprep.subr.mxu0 %v1628_v4 }
 0xbd9   :  { %999 = vmatpush1.msra.mxu0 %v1630_v5 }
 0xbda   :  { %1000 = vmatprep.subr.mxu0 %v1633_v6 }
 0xbdb   :  { %1001 = vmatpush1.msra.mxu0 %v1636_v7 }
 0xbdc   :  { %1002 = vmatprep.subr.mxu0 %v1642_v9 }
 0xbdd   :  { %1003 = vmatpush1.msra.mxu0 %v1649_v11 }
 0xbde   :  { %1004 = vmatprep.subr.mxu0 %v1659_v14 }
 0xbdf   :  { %1005 = vmatpush1.msra.mxu0 %v1665_v16 }
 0xbe0   :  { %1006 = vmatprep.subr.mxu0 %v1671_v18 }
 0xbe1   :  { %1007 = vmatpush1.msra.mxu0 %v1674_v19 }
 0xbe2   :  { %1008 = vmatprep.subr.mxu0 %v1677_v20 }
 0xbe3   :  { %1009 = vmatpush1.msra.mxu0 %v1681_v21 }
 0xbe4   :  { %1010 = vmatprep.subr.mxu0 %v1684_v22  ;;  %v841_v22 = vrot.slane %v737_v15, 7 }
 0xbe5   :  { %1011 = vmatpush1.msra.mxu0 %v1687_v23 }
 0xbe6   :  { %1391 = vmatprep.subr.mxu0 %v1555_v0 }
 0xc96   :  { %v814_v3 = vpop.f32.mrf.mxu0 }
 0xc97   :  { %v821_v9 = vrot.slane %v814_v3, 3 }
 0xc98   :  { %v816_v4 = vpop.f32.mrf.mxu0 }
 0xc99   :  { %v822_v5 = vrot.slane %v816_v4, 3  ;;  %v825_v11 = vadd.f32 %v821_v9, %v1746_v41 }
 0xc9b   :  { %v826_v6 = vadd.f32 %v822_v5, %v1739_v35  ;;  %v1346_v14 = vmul.f32 -1.442695, %v825_v11 }
 0xc9d   :  { %1470 = vtanh.f32 %v826_v6  ;;  %v1347_v2 = vmul.f32 -1.442695, %v826_v6 }
 0xc9e   :  { %1472 = vpow2.f32 %v1346_v14 }
 0xcaa   :  { %v1471_v7 = vpop.eup %1470 }
 0xcab   :  { %845 = vrot.lane.b32.xlu0 %v1471_v7, %s1557_s15  ;;  %v1473_v16 = vpop.eup %1472 }
 0xcac   :  { %v833_v18 = vadd.f32 1.0, %v1473_v16 }
 0xcae   :  { %1474 = vrcp.f32 %v833_v18 }
 0xcbb   :  { %v1475_v19 = vpop.eup %1474 }
 0xcbc   :  { %v843_v23 = vmul.f32 %v1475_v19, %v841_v22  ;;  %v1142_v22 = vld [vmem:[%s1959_s6 + $0x20] sm:$0xff] }
 0xd1d   :  { %v846_v20 = vpop.permute.xlu0 %845 }
 0xd1e   :  { %v848_v21 = vmul.f32 %v1475_v19, %v846_v20  ;;  %v1144_v20 = vld [vmem:[%s1959_s6 + $0x30] sm:$0xff] }
 0xd20   :  { %850 = vrot.lane.b32.xlu1 %v848_v21, %s1557_s15  ;;  %v1143_v21 = vld [vmem:[%s1959_s6 + $0x28] sm:$0xff] }
 0xd92   :  { %v851_v33 = vpop.permute.xlu1 %850 }
 0xd93   :  { %v853_v34 = vadd.f32 %v851_v33, %v843_v23  ;;  %v1141_v23 = vld [vmem:[%s1959_s6 + $0x18] sm:$0xff]  ;;  %v1140_v33 = vld [vmem:[%s1959_s6 + $0x10] sm:$0xff] }
 0xd95   :  { %1476 = vtanh.f32 %v853_v34  ;;  %v957_v60 = vrot.slane %v853_v34, 7  ;;  %v1139_v34 = vld [vmem:[%s1959_s6 + $0x8] sm:$0xff] }
 0xd96   :  { %1478 = vpow2.f32 %v1347_v2  ;;  %v1230_v2 = vld [vmem:[%s1961_s8 + $0x18] sm:$0xff] }
 0xda2   :  { %v1477_v36 = vpop.eup %1476 }
 0xda3   :  { %856 = vrot.lane.b32.xlu0 %v1477_v36, %s1557_s15  ;;  %v1479_v37 = vpop.eup %1478  ;;  %v1138_v36 = vld [vmem:[%s1959_s6] sm:$0xff] }
 0xda4   :  { %v834_v38 = vadd.f32 1.0, %v1479_v37 }
 0xda6   :  { %1480 = vrcp.f32 %v834_v38 }
 0xdb3   :  { %v1481_v40 = vpop.eup %1480 }
 0xe15   :  { %v857_v42 = vpop.permute.xlu0 %856 }
 0xe16   :  { %v859_v43 = vmul.f32 %v1481_v40, %v857_v42 }
 0xe18   :  { %v861_v44 = vrot.slane %v859_v43, 5  ;;  %v1101_v45 = vsel %vm1100_vm8, %v1099_v32, %v859_v43 }
 0xe1a   :  { %1348 = vmatmul.mubr.msk.f32.vlgmr.msra.gmra.mxu1 %vm174_vm3, %v861_v44 }
 0xe1b   :  { %1388 = vmatprep.mubr.msk.f32.mxu1 %vm1558_vm9, %v1555_v0 }
 0xeda   :  { %v930_v46 = vpop.f32.mrf.mxu1 }
 0xedb   :  { %v937_v51 = vrot.slane %v930_v46, 2 }
 0xedc   :  { %v932_v47 = vpop.f32.mrf.mxu1 }
 0xedd   :  { %v938_v48 = vrot.slane %v932_v47, 2  ;;  %v941_v52 = vadd.f32 %v937_v51, %v1746_v41 }
 0xedf   :  { %v942_v49 = vadd.f32 %v938_v48, %v1739_v35  ;;  %v1349_v53 = vmul.f32 -1.442695, %v941_v52 }
 0xee1   :  { %1482 = vtanh.f32 %v942_v49  ;;  %v1350_v8 = vmul.f32 -1.442695, %v942_v49 }
 0xee2   :  { %1484 = vpow2.f32 %v1349_v53 }
 0xeee   :  { %v1483_v50 = vpop.eup %1482 }
 0xeef   :  { %961 = vrot.lane.b32.xlu1 %v1483_v50, %s1557_s15  ;;  %v1485_v54 = vpop.eup %1484 }
 0xef0   :  { %v949_v55 = vadd.f32 1.0, %v1485_v54 }
 0xef2   :  { %1486 = vrcp.f32 %v949_v55 }
 0xeff   :  { %v1487_v56 = vpop.eup %1486 }
 0xf00   :  { %v959_v61 = vmul.f32 %v1487_v56, %v957_v60 }
 0xf61   :  { %v962_v57 = vpop.permute.xlu1 %961 }
 0xf62   :  { %v964_v59 = vmul.f32 %v1487_v56, %v962_v57 }
 0xf64   :  { %966 = vrot.lane.b32.xlu0 %v964_v59, %s1557_s15 }
 0xfd6   :  { %v967_v62 = vpop.permute.xlu0 %966 }
 0xfd7   :  { %v969_v63 = vadd.f32 %v967_v62, %v959_v61 }
 0xfd9   :  { %1488 = vtanh.f32 %v969_v63  ;;  %v1073_v14 = vrot.slane %v969_v63, 7 }
 0xfda   :  { %1490 = vpow2.f32 %v1350_v8 }
 0xfe6   :  { %v1489_v1 = vpop.eup %1488 }
 0xfe7   :  { %972 = vrot.lane.b32.xlu1 %v1489_v1, %s1557_s15  ;;  %v1491_v10 = vpop.eup %1490 }
 0xfe8   :  { %v950_v12 = vadd.f32 1.0, %v1491_v10  ;;  %v1105_v10 = vld [vmem:[%s1958_s5] sm:$0x3] }
 0xfea   :  { %1492 = vrcp.f32 %v950_v12  ;;  %v1131_v12 = vrot.slane %v1105_v10, %v68_v39  ;;  %v1228_v39 = vld [vmem:[%s1961_s8 + $0x8] sm:$0xff] }
 0xff7   :  { %v1493_v13 = vpop.eup %1492 }
0x1059   :  { %v973_v15 = vpop.permute.xlu1 %972 }
0x105a   :  { %v975_v58 = vmul.f32 %v1493_v13, %v973_v15  ;;  %v1136_v15 = vrot.slane %v1105_v10, %v72_v29  ;;  %v1354_v29 = vld [vmem:[%s1960_s7] ss:$0 sm:$0xff] }
0x105c   :  { %v977_v17 = vrot.slane %v975_v58, 6  ;;  %v1877_v24 = vsel %vm80_vm0, %v1101_v45, %v975_v58 }
0x105e   :  { %1351 = vmatmul.mubr.msk.f32.vlgmr.msra.gmra.mxu0 %vm174_vm3, %v977_v17 }
0x105f   :  { %1399 = vmatprep.mubr.msk.f32.mxu0 %vm1558_vm9, %v1555_v0  ;;  %1392 = vmatpush3.msra.mxu0 %v1230_v2 }
0x1060   :  { %1393 = vmatprep.subr.mxu0 %v1555_v0 }
0x111e   :  { %v1046_v25 = vpop.f32.mrf.mxu0 }
0x111f   :  { %v1053_v32 = vrot.slane %v1046_v25, 1  ;;  %v1229_v25 = vld [vmem:[%s1961_s8 + $0x10] sm:$0xff]  ;;  %s1528_s8 = scalar_lea.vmem %s1320_s19, 128 }
0x1120   :  { %v1048_v26 = vpop.f32.mrf.mxu0  ;;  %1394 = vmatpush3.msra.mxu0 %v1229_v25  ;;  %p1529_p5 = scmp.ne.s32.totalorder %s1320_s19, %s1528_s8  ;;  %p1534_p7 = scmp.lt.s32.totalorder %s1528_s8, %s1528_s8 }
0x1121   :  { %v1054_v27 = vrot.slane %v1048_v26, 1  ;;  %v1057_v3 = vadd.f32 %v1053_v32, %v1746_v41  ;;  %v1145_v41 = vld [vmem:[%s1959_s6 + $0x38] sm:$0xff]  ;;  %1395 = vmatprep.subr.mxu0 %v1555_v0  ;;  %v1356_v32 = vld [vmem:[%s1962_s9] ss:$0 sm:$0xff] }
0x1122   :  { %1373 = vmatpush3.msra.mxu1 %v1145_v41  ;;  %1396 = vmatpush3.msra.mxu0 %v1228_v39  ;;  %p1535_p8 = por %p1534_p7, %p1533_p6 }
0x1123   :  { %v1058_v30 = vadd.f32 %v1054_v27, %v1739_v35  ;;  %v1352_v4 = vmul.f32 -1.442695, %v1057_v3  ;;  %1374 = vmatprep.subr.mxu1 %v1555_v0  ;;  %1397 = vmatprep.subr.mxu0 %v1555_v0 }
0x1124   :  { %1375 = vmatpush3.msra.mxu1 %v1144_v20  ;;  %1398 = vmatpush3.msra.mxu0 %v1227_v28  ;;  %p1536_p9 = pnand %p1535_p8, %p1529_p5 }
0x1125   :  { %1494 = vtanh.f32 %v1058_v30  ;;  %1376 = vmatprep.subr.mxu1 %v1555_v0  ;;  %v1353_v37 = vmul.f32 -1.442695, %v1058_v30 }
0x1126   :  { %1496 = vpow2.f32 %v1352_v4  ;;  %1377 = vmatpush3.msra.mxu1 %v1143_v21 }
0x1127   :  { %1378 = vmatprep.subr.mxu1 %v1555_v0 }
0x1128   :  { %1379 = vmatpush3.msra.mxu1 %v1142_v22 }
0x1129   :  { %1380 = vmatprep.subr.mxu1 %v1555_v0 }
0x112a   :  { %1381 = vmatpush3.msra.mxu1 %v1141_v23 }
0x112b   :  { %1382 = vmatprep.subr.mxu1 %v1555_v0 }
0x112c   :  { %1383 = vmatpush3.msra.mxu1 %v1140_v33 }
0x112d   :  { %1384 = vmatprep.subr.mxu1 %v1555_v0 }
0x112e   :  { %1385 = vmatpush3.msra.mxu1 %v1139_v34 }
0x112f   :  { %1386 = vmatprep.subr.mxu1 %v1555_v0 }
0x1130   :  { %1387 = vmatpush3.msra.mxu1 %v1138_v36 }
0x1132   :  { %v1495_v31 = vpop.eup %1494 }
0x1133   :  { %1077 = vrot.lane.b32.xlu0 %v1495_v31, %s1557_s15  ;;  %v1497_v5 = vpop.eup %1496 }
0x1134   :  { %v1065_v6 = vadd.f32 1.0, %v1497_v5 }
0x1136   :  { %1498 = vrcp.f32 %v1065_v6 }
0x1143   :  { %v1499_v7 = vpop.eup %1498 }
0x1144   :  { %v1075_v16 = vmul.f32 %v1499_v7, %v1073_v14 }
0x11a5   :  { %v1078_v9 = vpop.permute.xlu0 %1077 }
0x11a6   :  { %v1080_v11 = vmul.f32 %v1499_v7, %v1078_v9 }
0x11a8   :  { %1082 = vrot.lane.b32.xlu1 %v1080_v11, %s1557_s15 }
0x121a   :  { %v1083_v35 = vpop.permute.xlu1 %1082 }
0x121b   :  { %v1085_v18 = vadd.f32 %v1083_v35, %v1075_v16 }
0x121d   :  { %1500 = vtanh.f32 %v1085_v18 }
0x121e   :  { %1502 = vpow2.f32 %v1353_v37 }
0x122a   :  { %v1501_v19 = vpop.eup %1500 }
0x122b   :  { %1088 = vrot.lane.b32.xlu0 %v1501_v19, %s1557_s15  ;;  %v1503_v38 = vpop.eup %1502 }
0x122c   :  { %v1066_v40 = vadd.f32 1.0, %v1503_v38 }
0x122e   :  { %1504 = vrcp.f32 %v1066_v40 }
0x123b   :  { %v1505_v42 = vpop.eup %1504 }
0x129d   :  { %v1089_v43 = vpop.permute.xlu0 %1088 }
0x129e   :  { %v1091_v44 = vmul.f32 %v1505_v42, %v1089_v43 }
0x12a0   :  { %v1104_v45 = vsel %vm1103_vm10, %v1877_v24, %v1091_v44 }
0x12a1   :  { %v1106_v46 = vsel %vm174_vm3, %v1104_v45, 0.0 }
0x12a2   :  { %v1107_v47 = vrot.slane %v1106_v46, 4 }
0x12a4   :  { %v1108_v48 = vadd.f32 %v1107_v47, %v1106_v46 }
0x12a6   :  { %v1109_v49 = vrot.slane %v1108_v48, 2 }
0x12a8   :  { %v1110_v50 = vadd.f32 %v1109_v49, %v1108_v48 }
0x12aa   :  { %v1111_v51 = vrot.slane %v1110_v50, 1 }
0x12ac   :  { %v1112_v52 = vadd.f32 %v1111_v51, %v1110_v50 }
0x12ae   :  { %v1114_v53 = vmul.f32 0.125, %v1112_v52 }
0x12b0   :  { %v1115_v54 = vsub.f32 %v1104_v45, %v1114_v53 }
0x12b2   :  { %v1116_v55 = vmul.f32 %v1115_v54, %v1115_v54 }
0x12b4   :  { %v1117_v56 = vsel %vm174_vm3, %v1116_v55, 0.0 }
0x12b5   :  { %v1118_v57 = vrot.slane %v1117_v56, 4 }
0x12b7   :  { %v1119_v59 = vadd.f32 %v1118_v57, %v1117_v56 }
0x12b9   :  { %v1120_v60 = vrot.slane %v1119_v59, 2 }
0x12bb   :  { %v1121_v61 = vadd.f32 %v1120_v60, %v1119_v59 }
0x12bd   :  { %v1122_v62 = vrot.slane %v1121_v61, 1 }
0x12bf   :  { %v1123_v63 = vadd.f32 %v1122_v62, %v1121_v61 }
0x12c1   :  { %v1124_v1 = vmul.f32 0.125, %v1123_v63 }
0x12c3   :  { %v1125_v8 = vadd.f32 1e-05, %v1124_v1 }
0x12c5   :  { %1506 = vrsqrt.f32 %v1125_v8 }
0x12d2   :  { %v1507_v13 = vpop.eup %1506 }
0x12d3   :  { %v1127_v58 = vmul.f32 %v1507_v13, %v1115_v54 }
0x12d5   :  { %v1132_v17 = vmul.f32 %v1131_v12, %v1127_v58 }
0x12d7   :  { %v1137_v24 = vadd.f32 %v1136_v15, %v1132_v17 }
0x12d9   :  { %1389 = vmatmul.mubr.msk.f32.vlgmr.msra.gmra.mxu1 %vm174_vm3, %v1137_v24 }
0x1399   :  { %v1222_v26 = vpop.f32.mrf.mxu1 }
0x139a   :  { %v1223_v27 = vadd.f32 %v1354_v29, %v1222_v26 }
0x139b   :  { %v1390_v30 = vpop.f32.mrf.mxu1 }
0x139c   :  { %v1226_v31 = vmax.f32 %v1223_v27, 0.0 }
0x139e   :  { %1400 = vmatmul.mubr.msk.f32.vlgmr.msra.gmra.mxu0 %vm1238_vm11, %v1226_v31 }
0x145e   :  { %v1308_v0 = vpop.f32.mrf.mxu0 }
0x145f   :  { %v1309_v3 = vadd.f32 %v1356_v32, %v1308_v0 }
0x1460   :  { %v1401_v4 = vpop.f32.mrf.mxu0 }
0x1461   :  { %1312 = vst [vmem:[#allocation5] sm:$0xff] %v1309_v3 }
0x1462   :  { %1539 = shalt.err (!%p1536_p9)
}
0x1463   :  { %1322 = dma.vmem_to_hbm [thread:$0]  %s1320_s19, 128, %s1963_s10, [#allocation4]  }
0x1464   :  { %1550 = dma.done.wait [#allocation4], 128  }
0x1465   :  { %1551 = vsyncadd [#allocation4], 4294967168 }
0x1466   :  { %1326 = vsyncpa [#allocation3], 1 }
0x1467   :  { %1327 = vsyncpa [#allocation4], 1 }

</bundles_post_ra>
